<compile_context>
chip_gen: v5e
topology: v5e:2x2
jax: 0.10.0
libtpu: 0.0.40
codegen_flags: <defaults>
</compile_context>

<pallas_src>
import functools
import numpy as np

import jax
import jax.numpy as jnp
from jax.experimental import pallas as pl
from jax.experimental.pallas import tpu as pltpu


def _round_up(v, m):
    return (v + m - 1) // m * m


# ----------------------------------------------------------------------------
# Kernel
# ----------------------------------------------------------------------------
def hyperlinear_kernel(x_ref, wizT_ref, biz_ref, wg_ref, rrep_ref, seg2_ref,
                       wstack_ref, o_ref, *, mxu_dtype):
    x = x_ref[...]                                                   # (bt, ninp) f32
    x_mx = x.astype(mxu_dtype)

    # z = iz(x)
    z = jnp.dot(x_mx, wizT_ref[...],
                preferred_element_type=jnp.float32) + biz_ref[...]   # (bt, nz)

    # G[b, l*nz + k] = sum_j x[b,j] * W_zz[j*nz + k, l]
    # Dominant matmul, contraction depth K = ninp (fills the MXU array).
    g = jnp.dot(x_mx, wg_ref[...], preferred_element_type=jnp.float32)  # (bt, nzk_p)

    # zt[b, l*nz + k] = z[b, l] -- replication on the MXU (0/1 matrix), no
    # lane concatenates / XLU shuffles.
    zt = jnp.dot(z, rrep_ref[...], preferred_element_type=jnp.float32)  # (bt, nzk_p)

    # u1[b, k] = sum_l z[b,l] * G[b, l*nz + k]
    # (elementwise product in f32 -- v5e-safe -- then one segment-sum matmul)
    u1 = jnp.dot(g * zt, seg2_ref[...], preferred_element_type=jnp.float32)  # (bt, nz)

    xsum = jnp.sum(x, axis=-1, keepdims=True)                        # (bt, 1)
    ones = jnp.ones_like(xsum)                                       # (bt, 1)

    # Fused epilogue: single MXU launch computes
    #   u1 @ WzW^T + z @ Wzb^T + xsum * bzW + x @ (Bzz @ WzW^T) + bzb
    a = jnp.concatenate([u1, z, xsum, x, ones], axis=-1).astype(mxu_dtype)
    out = jnp.dot(a, wstack_ref[...], preferred_element_type=jnp.float32)
    o_ref[...] = out.astype(o_ref.dtype)


# ----------------------------------------------------------------------------
# Generation-aware VMEM capacity
# ----------------------------------------------------------------------------
def _vmem_capacity_bytes():
    try:
        return int(pltpu.get_tpu_info().vmem_capacity_bytes)
    except Exception:
        return 64 * 1024 * 1024     # conservative fallback (v7x per-TensorCore)


# ----------------------------------------------------------------------------
# Wrapper
# ----------------------------------------------------------------------------
def hyperlinear(x, params, *, bt=256, mxu_dtype=jnp.float32):
    """x: (..., ninp).  Returns (..., nout).

    mxu_dtype=jnp.bfloat16 halves the DMA/VMEM bytes of the big static
    operands and doubles MXU throughput on v6e/v7x (accumulation stays f32).
    """
    f32 = jnp.float32
    nz, ninp = params["W_iz"].shape
    nout = params["W_zb"].shape[0]

    lead = x.shape[:-1]
    B = int(np.prod(lead)) if lead else 1
    xf = x.reshape(B, ninp).astype(f32)

    nzk = nz * nz
    nzk_p = _round_up(nzk, 128)        # lane-dense wide intermediates
    nout_p = _round_up(nout, 128)      # lane-dense output stores

    # ---- constant (grid-invariant) operands --------------------------------
    wizT = params["W_iz"].T.astype(mxu_dtype)                        # (ninp, nz)
    biz = params["b_iz"][None, :].astype(f32)                        # (1, nz)

    # Wzz_jflat[j, l*nz + k] = W_zz[j*nz + k, l]   (z-tiled restructure)
    wzz_jflat = (params["W_zz"].reshape(ninp, nz, nz)
                 .transpose(0, 2, 1).reshape(ninp, nzk))
    wg = jnp.pad(wzz_jflat.astype(f32),
                 ((0, 0), (0, nzk_p - nzk))).astype(mxu_dtype)       # (ninp, nzk_p)

    # rrep[l, l'*nz + k] = (l == l')  ->  zt = z @ rrep   (exact 0/1, kept f32)
    rrep = jnp.pad(jnp.kron(jnp.eye(nz, dtype=f32), jnp.ones((1, nz), f32)),
                   ((0, 0), (0, nzk_p - nzk)))                       # (nz, nzk_p)
    # seg2[l*nz + k, k'] = (k == k')  -> segment sum over l            (f32)
    seg2 = jnp.pad(jnp.kron(jnp.ones((nz, 1), f32), jnp.eye(nz, dtype=f32)),
                   ((0, nzk_p - nzk), (0, 0)))                       # (nzk_p, nz)

    # Fused epilogue weights (K = 2*nz + ninp + 2), padded to nout_p lanes.
    bzz_mat = params["b_zz"].reshape(ninp, nz).astype(f32)           # Bzz[j, k]
    bzzw = jnp.dot(bzz_mat, params["W_zW"].T.astype(f32),
                   precision=jax.lax.Precision.HIGHEST)              # (ninp, nout)
    wstack = jnp.concatenate([
        params["W_zW"].T.astype(f32),          # rows for u1
        params["W_zb"].T.astype(f32),          # rows for z
        params["b_zW"][None, :].astype(f32),   # row  for xsum
        bzzw,                                  # rows for x  (folds zz bias)
        params["b_zb"][None, :].astype(f32),   # row  for ones
    ], axis=0)
    wstack = jnp.pad(wstack, ((0, 0), (0, nout_p - nout))).astype(mxu_dtype)

    consts = (wizT, biz, wg, rrep, seg2, wstack)
    const_bytes = sum(int(np.prod(a.shape)) * a.dtype.itemsize for a in consts)

    # ---- batch-row tiling ---------------------------------------------------
    Bp8 = _round_up(B, 8)
    bt = max(8, min(bt, Bp8))
    bt = bt // 8 * 8
    # Keep >= 2 grid steps whenever possible so ("parallel",) can shard the
    # batch axis over v7x's two TensorCores (no effect on v5e/v6e).
    if Bp8 >= 16:
        bt = min(bt, max(8, (Bp8 // 2) // 8 * 8))

    cap = _vmem_capacity_bytes()
    budget = int(0.78 * cap)

    def _need(bt_, wrep):
        f = 4
        io = 2 * bt_ * (ninp + nout_p) * f                        # dbl-buffered x / out
        tmp = bt_ * (3 * nzk_p + 6 * nz + 2 * ninp + 2 * nout_p + 8) * f
        return io + wrep * const_bytes + tmp

    while bt > 8 and _need(bt, 1) > budget:                       # VMEM-aware tile cap
        bt = max(8, (bt // 2) // 8 * 8)

    Bp = _round_up(B, bt)
    if Bp != B:
        xf = jnp.pad(xf, ((0, Bp - B), (0, 0)))

    # ---- pallas call --------------------------------------------------------
    def _call(single_buffer_weights):
        wrep = 1 if single_buffer_weights else 2
        if single_buffer_weights:
            # Constant index_map -> single buffer suffices; halves weight VMEM.
            cspec = lambda a: pl.BlockSpec(a.shape, lambda i: (0, 0),
                                           pipeline_mode=pl.Buffered(1))
        else:
            cspec = lambda a: pl.BlockSpec(a.shape, lambda i: (0, 0))
        vmem_limit = int(min(max(int(1.4 * _need(bt, wrep)), 32 << 20), budget))
        return pl.pallas_call(
            functools.partial(hyperlinear_kernel, mxu_dtype=mxu_dtype),
            out_shape=jax.ShapeDtypeStruct((Bp, nout_p), jnp.float32),
            grid_spec=pltpu.PrefetchScalarGridSpec(
                num_scalar_prefetch=0,
                grid=(Bp // bt,),
                in_specs=[pl.BlockSpec((bt, ninp), lambda i: (i, 0))]
                         + [cspec(a) for a in consts],
                out_specs=pl.BlockSpec((bt, nout_p), lambda i: (i, 0)),
            ),
            compiler_params=pltpu.CompilerParams(
                dimension_semantics=("parallel",),
                vmem_limit_bytes=vmem_limit),
        )(xf, *consts)

    try:
        out = _call(True)      # single-buffered constant weights
    except Exception:
        # Fallback if this jax build rejects pipeline_mode=pl.Buffered(1):
        # default double-buffered constants (identical results, more VMEM).
        out = _call(False)

    return out[:B, :nout].reshape(*lead, nout)


# ----------------------------------------------------------------------------
# Pure-JAX reference (mirrors the PyTorch forward literally)
# ----------------------------------------------------------------------------
def hyperlinear_ref(x, params):
    nz, ninp = params["W_iz"].shape
    nout = params["W_zb"].shape[0]
    lead = x.shape[:-1]
    xf = x.reshape(-1, ninp)
    z = xf @ params["W_iz"].T + params["b_iz"]
    M = (z @ params["W_zz"].T + params["b_zz"]).reshape(-1, ninp, nz)
    W = jnp.einsum("bik,ok->bio", M, params["W_zW"]) + params["b_zW"]
    b = z @ params["W_zb"].T + params["b_zb"]
    out = jnp.einsum("bi,bio->bo", xf, W) + b
    return out.reshape(*lead, nout)


# ----------------------------------------------------------------------------
# Deterministic parameter init (PyTorch nn.Linear default: U(-1/sqrt(fan_in), +))
# ----------------------------------------------------------------------------
def init_params(key, ninp, nout, nz):
    def linear(key, fan_out, fan_in):
        kw, kb = jax.random.split(key)
        lim = 1.0 / np.sqrt(fan_in)
        w = jax.random.uniform(kw, (fan_out, fan_in), jnp.float32, -lim, lim)
        b = jax.random.uniform(kb, (fan_out,), jnp.float32, -lim, lim)
        return w, b

    k1, k2, k3, k4 = jax.random.split(key, 4)
    W_zb, b_zb = linear(k1, nout, nz)          # zb: Linear(nz, nout)
    W_iz, b_iz = linear(k2, nz, ninp)          # iz: Linear(ninp, nz)
    W_zz, b_zz = linear(k3, nz * ninp, nz)     # zz: Linear(nz, nz*ninp)
    W_zW, b_zW = linear(k4, nout, nz)          # zW: Linear(nz, nout)
    return dict(W_zb=W_zb, b_zb=b_zb, W_iz=W_iz, b_iz=b_iz,
                W_zz=W_zz, b_zz=b_zz, W_zW=W_zW, b_zW=b_zW)


if __name__ == "__main__":
    ninp, nout, nz = 32, 16, 10
    key = jax.random.PRNGKey(0)
    kp, kx = jax.random.split(key)

    params = init_params(kp, ninp, nout, nz)
    # data: (batch=2, seq=8, ninp=32), feature-last as in the PyTorch module
    x = jax.random.normal(kx, (2, 8, ninp), jnp.float32)

    ref = hyperlinear_ref(x, params)

    # f32 MXU operands: tight check.
    out_f32 = jax.block_until_ready(hyperlinear(x, params))
    assert out_f32.shape == (2, 8, nout)
    np.testing.assert_allclose(np.asarray(out_f32), np.asarray(ref),
                               rtol=1e-4, atol=1e-4)

    # bf16 MXU operands (f32 accumulation): loose check.
    out_bf16 = jax.block_until_ready(
        hyperlinear(x, params, mxu_dtype=jnp.bfloat16))
    np.testing.assert_allclose(np.asarray(out_bf16), np.asarray(ref),
                               rtol=5e-2, atol=5e-2)

    print("KERNEL_OK")
</pallas_src>

<mosaic_0001>
module attributes {stable_mosaic.version = 11 : i64} {
  func.func @hyperlinear_kernel(%arg0: i32, %arg1: memref<8x32xf32, #tpu.memory_space<vmem>>, %arg2: memref<32x10xf32, #tpu.memory_space<vmem>>, %arg3: memref<1x10xf32, #tpu.memory_space<vmem>>, %arg4: memref<32x128xf32, #tpu.memory_space<vmem>>, %arg5: memref<10x128xf32, #tpu.memory_space<vmem>>, %arg6: memref<128x10xf32, #tpu.memory_space<vmem>>, %arg7: memref<54x128xf32, #tpu.memory_space<vmem>>, %arg8: memref<8x128xf32, #tpu.memory_space<vmem>>) attributes {dimension_semantics = [#tpu.dimension_semantics<parallel>], iteration_bounds = array<i64: 2>, scalar_prefetch = 0 : i64, scratch_operands = 0 : i64, tpu.core_type = #tpu.core_type<tc>, window_params = [{transform_indices = @transform_0, window_bounds = array<i64: 8, 32>}, {pipeline_mode = #tpu.pipeline_mode<synchronous>, transform_indices = @transform_1, window_bounds = array<i64: 32, 10>}, {pipeline_mode = #tpu.pipeline_mode<synchronous>, transform_indices = @transform_2, window_bounds = array<i64: 1, 10>}, {pipeline_mode = #tpu.pipeline_mode<synchronous>, transform_indices = @transform_3, window_bounds = array<i64: 32, 128>}, {pipeline_mode = #tpu.pipeline_mode<synchronous>, transform_indices = @transform_4, window_bounds = array<i64: 10, 128>}, {pipeline_mode = #tpu.pipeline_mode<synchronous>, transform_indices = @transform_5, window_bounds = array<i64: 128, 10>}, {pipeline_mode = #tpu.pipeline_mode<synchronous>, transform_indices = @transform_6, window_bounds = array<i64: 54, 128>}, {transform_indices = @transform_7, window_bounds = array<i64: 8, 128>}]} {
    %c0 = arith.constant 0 : index
    %c0_0 = arith.constant 0 : index
    %0 = vector.load %arg1[%c0, %c0_0] : memref<8x32xf32, #tpu.memory_space<vmem>>, vector<8x32xf32>
    %c0_1 = arith.constant 0 : index
    %c0_2 = arith.constant 0 : index
    %1 = vector.load %arg2[%c0_1, %c0_2] : memref<32x10xf32, #tpu.memory_space<vmem>>, vector<32x10xf32>
    %cst = arith.constant dense<0.000000e+00> : vector<8x10xf32>
    %2 = tpu.matmul %0, %1, %cst {dimension_numbers = #tpu.dot_dimension_numbers<[1], [0], [0], [1], [0, 0, 1, 1], [], []>} : vector<8x32xf32>, vector<32x10xf32>, vector<8x10xf32> -> vector<8x10xf32>
    %c0_3 = arith.constant 0 : index
    %c0_4 = arith.constant 0 : index
    %3 = vector.load %arg3[%c0_3, %c0_4] : memref<1x10xf32, #tpu.memory_space<vmem>>, vector<1x10xf32>
    %4 = vector.broadcast %3 : vector<1x10xf32> to vector<8x10xf32>
    %5 = arith.addf %2, %4 : vector<8x10xf32>
    %c0_5 = arith.constant 0 : index
    %c0_6 = arith.constant 0 : index
    %6 = vector.load %arg4[%c0_5, %c0_6] : memref<32x128xf32, #tpu.memory_space<vmem>>, vector<32x128xf32>
    %cst_7 = arith.constant dense<0.000000e+00> : vector<8x128xf32>
    %7 = tpu.matmul %0, %6, %cst_7 {dimension_numbers = #tpu.dot_dimension_numbers<[1], [0], [0], [1], [0, 0, 1, 1], [], []>} : vector<8x32xf32>, vector<32x128xf32>, vector<8x128xf32> -> vector<8x128xf32>
    %c0_8 = arith.constant 0 : index
    %c0_9 = arith.constant 0 : index
    %8 = vector.load %arg5[%c0_8, %c0_9] : memref<10x128xf32, #tpu.memory_space<vmem>>, vector<10x128xf32>
    %cst_10 = arith.constant dense<0.000000e+00> : vector<8x128xf32>
    %9 = tpu.matmul %5, %8, %cst_10 {dimension_numbers = #tpu.dot_dimension_numbers<[1], [0], [0], [1], [0, 0, 1, 1], [], []>} : vector<8x10xf32>, vector<10x128xf32>, vector<8x128xf32> -> vector<8x128xf32>
    %10 = arith.mulf %7, %9 : vector<8x128xf32>
    %c0_11 = arith.constant 0 : index
    %c0_12 = arith.constant 0 : index
    %11 = vector.load %arg6[%c0_11, %c0_12] : memref<128x10xf32, #tpu.memory_space<vmem>>, vector<128x10xf32>
    %cst_13 = arith.constant dense<0.000000e+00> : vector<8x10xf32>
    %12 = tpu.matmul %10, %11, %cst_13 {dimension_numbers = #tpu.dot_dimension_numbers<[1], [0], [0], [1], [0, 0, 1, 1], [], []>} : vector<8x128xf32>, vector<128x10xf32>, vector<8x10xf32> -> vector<8x10xf32>
    %cst_14 = arith.constant dense<0.000000e+00> : vector<8xf32>
    %13 = vector.multi_reduction <add>, %0, %cst_14 [1] : vector<8x32xf32> to vector<8xf32>
    %14 = vector.shape_cast %13 : vector<8xf32> to vector<8x1xf32>
    %cst_15 = arith.constant 1.000000e+00 : f32
    %15 = vector.broadcast %cst_15 : f32 to vector<8x1xf32>
    %16 = tpu.concatenate %12, %5, %14, %0, %15 in 1 : vector<8x10xf32>, vector<8x10xf32>, vector<8x1xf32>, vector<8x32xf32>, vector<8x1xf32> -> vector<8x54xf32>
    %c0_16 = arith.constant 0 : index
    %c0_17 = arith.constant 0 : index
    %17 = vector.load %arg7[%c0_16, %c0_17] : memref<54x128xf32, #tpu.memory_space<vmem>>, vector<54x128xf32>
    %cst_18 = arith.constant dense<0.000000e+00> : vector<8x128xf32>
    %18 = tpu.matmul %16, %17, %cst_18 {dimension_numbers = #tpu.dot_dimension_numbers<[1], [0], [0], [1], [0, 0, 1, 1], [], []>} : vector<8x54xf32>, vector<54x128xf32>, vector<8x128xf32> -> vector<8x128xf32>
    %c0_19 = arith.constant 0 : index
    %c0_20 = arith.constant 0 : index
    %19 = vector.load %arg8[%c0_19, %c0_20] : memref<8x128xf32, #tpu.memory_space<vmem>>, vector<8x128xf32>
    tpu.vector_store %arg8[%c0_19, %c0_20], %18 {strides = array<i32>} : memref<8x128xf32, #tpu.memory_space<vmem>>, vector<8x128xf32>,
    return
  }
  func.func @transform_0(%arg0: i32) -> (i32, i32) {
    %c0_i32 = arith.constant 0 : i32
    %c0_i32_0 = arith.constant 0 : i32
    return %arg0, %c0_i32 : i32, i32
  }
  func.func @transform_1(%arg0: i32) -> (i32, i32) {
    %c0_i32 = arith.constant 0 : i32
    %c0_i32_0 = arith.constant 0 : i32
    %c0_i32_1 = arith.constant 0 : i32
    return %c0_i32, %c0_i32_0 : i32, i32
  }
  func.func @transform_2(%arg0: i32) -> (i32, i32) {
    %c0_i32 = arith.constant 0 : i32
    %c0_i32_0 = arith.constant 0 : i32
    %c0_i32_1 = arith.constant 0 : i32
    return %c0_i32, %c0_i32_0 : i32, i32
  }
  func.func @transform_3(%arg0: i32) -> (i32, i32) {
    %c0_i32 = arith.constant 0 : i32
    %c0_i32_0 = arith.constant 0 : i32
    %c0_i32_1 = arith.constant 0 : i32
    return %c0_i32, %c0_i32_0 : i32, i32
  }
  func.func @transform_4(%arg0: i32) -> (i32, i32) {
    %c0_i32 = arith.constant 0 : i32
    %c0_i32_0 = arith.constant 0 : i32
    %c0_i32_1 = arith.constant 0 : i32
    return %c0_i32, %c0_i32_0 : i32, i32
  }
  func.func @transform_5(%arg0: i32) -> (i32, i32) {
    %c0_i32 = arith.constant 0 : i32
    %c0_i32_0 = arith.constant 0 : i32
    %c0_i32_1 = arith.constant 0 : i32
    return %c0_i32, %c0_i32_0 : i32, i32
  }
  func.func @transform_6(%arg0: i32) -> (i32, i32) {
    %c0_i32 = arith.constant 0 : i32
    %c0_i32_0 = arith.constant 0 : i32
    %c0_i32_1 = arith.constant 0 : i32
    return %c0_i32, %c0_i32_0 : i32, i32
  }
  func.func @transform_7(%arg0: i32) -> (i32, i32) {
    %c0_i32 = arith.constant 0 : i32
    %c0_i32_0 = arith.constant 0 : i32
    return %arg0, %c0_i32 : i32, i32
  }
}

module attributes {stable_mosaic.version = 11 : i64} {
  func.func @hyperlinear_kernel(%arg0: i32, %arg1: memref<8x32xf32, #tpu.memory_space<vmem>>, %arg2: memref<32x10xf32, #tpu.memory_space<vmem>>, %arg3: memref<1x10xf32, #tpu.memory_space<vmem>>, %arg4: memref<32x128xf32, #tpu.memory_space<vmem>>, %arg5: memref<10x128xf32, #tpu.memory_space<vmem>>, %arg6: memref<128x10xf32, #tpu.memory_space<vmem>>, %arg7: memref<54x128xf32, #tpu.memory_space<vmem>>, %arg8: memref<8x128xf32, #tpu.memory_space<vmem>>) attributes {dimension_semantics = [#tpu.dimension_semantics<parallel>], iteration_bounds = array<i64: 2>, scalar_prefetch = 0 : i64, scratch_operands = 0 : i64, tpu.core_type = #tpu.core_type<tc>, window_params = [{transform_indices = @transform_0, window_bounds = array<i64: 8, 32>}, {pipeline_mode = #tpu.pipeline_mode<synchronous>, transform_indices = @transform_1, window_bounds = array<i64: 32, 10>}, {pipeline_mode = #tpu.pipeline_mode<synchronous>, transform_indices = @transform_2, window_bounds = array<i64: 1, 10>}, {pipeline_mode = #tpu.pipeline_mode<synchronous>, transform_indices = @transform_3, window_bounds = array<i64: 32, 128>}, {pipeline_mode = #tpu.pipeline_mode<synchronous>, transform_indices = @transform_4, window_bounds = array<i64: 10, 128>}, {pipeline_mode = #tpu.pipeline_mode<synchronous>, transform_indices = @transform_5, window_bounds = array<i64: 128, 10>}, {pipeline_mode = #tpu.pipeline_mode<synchronous>, transform_indices = @transform_6, window_bounds = array<i64: 54, 128>}, {transform_indices = @transform_7, window_bounds = array<i64: 8, 128>}]} {
    %c0 = arith.constant 0 : index
    %c0_0 = arith.constant 0 : index
    %0 = vector.load %arg1[%c0, %c0_0] : memref<8x32xf32, #tpu.memory_space<vmem>>, vector<8x32xf32>
    %c0_1 = arith.constant 0 : index
    %c0_2 = arith.constant 0 : index
    %1 = vector.load %arg2[%c0_1, %c0_2] : memref<32x10xf32, #tpu.memory_space<vmem>>, vector<32x10xf32>
    %cst = arith.constant dense<0.000000e+00> : vector<8x10xf32>
    %2 = tpu.matmul %0, %1, %cst {dimension_numbers = #tpu.dot_dimension_numbers<[1], [0], [0], [1], [0, 0, 1, 1], [], []>} : vector<8x32xf32>, vector<32x10xf32>, vector<8x10xf32> -> vector<8x10xf32>
    %c0_3 = arith.constant 0 : index
    %c0_4 = arith.constant 0 : index
    %3 = vector.load %arg3[%c0_3, %c0_4] : memref<1x10xf32, #tpu.memory_space<vmem>>, vector<1x10xf32>
    %4 = vector.broadcast %3 : vector<1x10xf32> to vector<8x10xf32>
    %5 = arith.addf %2, %4 : vector<8x10xf32>
    %c0_5 = arith.constant 0 : index
    %c0_6 = arith.constant 0 : index
    %6 = vector.load %arg4[%c0_5, %c0_6] : memref<32x128xf32, #tpu.memory_space<vmem>>, vector<32x128xf32>
    %cst_7 = arith.constant dense<0.000000e+00> : vector<8x128xf32>
    %7 = tpu.matmul %0, %6, %cst_7 {dimension_numbers = #tpu.dot_dimension_numbers<[1], [0], [0], [1], [0, 0, 1, 1], [], []>} : vector<8x32xf32>, vector<32x128xf32>, vector<8x128xf32> -> vector<8x128xf32>
    %c0_8 = arith.constant 0 : index
    %c0_9 = arith.constant 0 : index
    %8 = vector.load %arg5[%c0_8, %c0_9] : memref<10x128xf32, #tpu.memory_space<vmem>>, vector<10x128xf32>
    %cst_10 = arith.constant dense<0.000000e+00> : vector<8x128xf32>
    %9 = tpu.matmul %5, %8, %cst_10 {dimension_numbers = #tpu.dot_dimension_numbers<[1], [0], [0], [1], [0, 0, 1, 1], [], []>} : vector<8x10xf32>, vector<10x128xf32>, vector<8x128xf32> -> vector<8x128xf32>
    %10 = arith.mulf %7, %9 : vector<8x128xf32>
    %c0_11 = arith.constant 0 : index
    %c0_12 = arith.constant 0 : index
    %11 = vector.load %arg6[%c0_11, %c0_12] : memref<128x10xf32, #tpu.memory_space<vmem>>, vector<128x10xf32>
    %cst_13 = arith.constant dense<0.000000e+00> : vector<8x10xf32>
    %12 = tpu.matmul %10, %11, %cst_13 {dimension_numbers = #tpu.dot_dimension_numbers<[1], [0], [0], [1], [0, 0, 1, 1], [], []>} : vector<8x128xf32>, vector<128x10xf32>, vector<8x10xf32> -> vector<8x10xf32>
    %cst_14 = arith.constant dense<0.000000e+00> : vector<8xf32>
    %13 = vector.multi_reduction <add>, %0, %cst_14 [1] : vector<8x32xf32> to vector<8xf32>
    %14 = vector.shape_cast %13 : vector<8xf32> to vector<8x1xf32>
    %cst_15 = arith.constant 1.000000e+00 : f32
    %15 = vector.broadcast %cst_15 : f32 to vector<8x1xf32>
    %16 = tpu.concatenate %12, %5, %14, %0, %15 in 1 : vector<8x10xf32>, vector<8x10xf32>, vector<8x1xf32>, vector<8x32xf32>, vector<8x1xf32> -> vector<8x54xf32>
    %c0_16 = arith.constant 0 : index
    %c0_17 = arith.constant 0 : index
    %17 = vector.load %arg7[%c0_16, %c0_17] : memref<54x128xf32, #tpu.memory_space<vmem>>, vector<54x128xf32>
    %cst_18 = arith.constant dense<0.000000e+00> : vector<8x128xf32>
    %18 = tpu.matmul %16, %17, %cst_18 {dimension_numbers = #tpu.dot_dimension_numbers<[1], [0], [0], [1], [0, 0, 1, 1], [], []>} : vector<8x54xf32>, vector<54x128xf32>, vector<8x128xf32> -> vector<8x128xf32>
    %c0_19 = arith.constant 0 : index
    %c0_20 = arith.constant 0 : index
    %19 = vector.load %arg8[%c0_19, %c0_20] : memref<8x128xf32, #tpu.memory_space<vmem>>, vector<8x128xf32>
    tpu.vector_store %arg8[%c0_19, %c0_20], %18 {strides = array<i32>} : memref<8x128xf32, #tpu.memory_space<vmem>>, vector<8x128xf32>,
    return
  }
  func.func @transform_0(%arg0: i32) -> (i32, i32) {
    %c0_i32 = arith.constant 0 : i32
    %c0_i32_0 = arith.constant 0 : i32
    return %arg0, %c0_i32 : i32, i32
  }
  func.func @transform_1(%arg0: i32) -> (i32, i32) {
    %c0_i32 = arith.constant 0 : i32
    %c0_i32_0 = arith.constant 0 : i32
    %c0_i32_1 = arith.constant 0 : i32
    return %c0_i32, %c0_i32_0 : i32, i32
  }
  func.func @transform_2(%arg0: i32) -> (i32, i32) {
    %c0_i32 = arith.constant 0 : i32
    %c0_i32_0 = arith.constant 0 : i32
    %c0_i32_1 = arith.constant 0 : i32
    return %c0_i32, %c0_i32_0 : i32, i32
  }
  func.func @transform_3(%arg0: i32) -> (i32, i32) {
    %c0_i32 = arith.constant 0 : i32
    %c0_i32_0 = arith.constant 0 : i32
    %c0_i32_1 = arith.constant 0 : i32
    return %c0_i32, %c0_i32_0 : i32, i32
  }
  func.func @transform_4(%arg0: i32) -> (i32, i32) {
    %c0_i32 = arith.constant 0 : i32
    %c0_i32_0 = arith.constant 0 : i32
    %c0_i32_1 = arith.constant 0 : i32
    return %c0_i32, %c0_i32_0 : i32, i32
  }
  func.func @transform_5(%arg0: i32) -> (i32, i32) {
    %c0_i32 = arith.constant 0 : i32
    %c0_i32_0 = arith.constant 0 : i32
    %c0_i32_1 = arith.constant 0 : i32
    return %c0_i32, %c0_i32_0 : i32, i32
  }
  func.func @transform_6(%arg0: i32) -> (i32, i32) {
    %c0_i32 = arith.constant 0 : i32
    %c0_i32_0 = arith.constant 0 : i32
    %c0_i32_1 = arith.constant 0 : i32
    return %c0_i32, %c0_i32_0 : i32, i32
  }
  func.func @transform_7(%arg0: i32) -> (i32, i32) {
    %c0_i32 = arith.constant 0 : i32
    %c0_i32_0 = arith.constant 0 : i32
    return %arg0, %c0_i32 : i32, i32
  }
}

</mosaic_0001>

<bundles_post_ra>
// kernel: tpu_custom_call.1
= control target key start
LH: loop header
LB: loop body
LE: loop exit
PB: predicated region body
PF: predicated region fallthrough
CT: control target
= control target key end

     0   :  { %12 = vsyncpa [#allocation3], 0  ;;  %s881_s0 = inlined_call_operand.vmem [shape: f32[16,32], index: 0, kind: input, shape index: {}]   ;;  %s882_s1 = inlined_call_operand.vmem [shape: f32[32,10], index: 1, kind: input, shape index: {}]   ;;  %s883_s2 = inlined_call_operand.vmem [shape: f32[1,10], index: 2, kind: input, shape index: {}]   ;;  %s884_s3 = inlined_call_operand.vmem [shape: f32[32,128], index: 3, kind: input, shape index: {}]   ;;  %s885_s4 = inlined_call_operand.vmem [shape: f32[10,128], index: 4, kind: input, shape index: {}]   ;;  %s886_s5 = inlined_call_operand.vmem [shape: f32[128,10], index: 5, kind: input, shape index: {}]   ;;  %s887_s6 = inlined_call_operand.vmem [shape: f32[54,128], index: 6, kind: input, shape index: {}]   ;;  %s888_s7 = inlined_call_operand.hbm [shape: f32[16,128], index: 7, kind: output, shape index: {}]  }
   0x1   :  { %14 = vsyncpa [#allocation3 + $0x1], 0  ;;  %s689_s24 = smov 0   ;;  %s691_s25 = smov 0  }
   0x2   :  { %s693_s26 = smov 0   ;;  %s695_s27 = smov 0  }
   0x3 LB: > { %s710_s28 = sadd.s32 4294967295, %s645_s27   ;;  %s525_s29 = sadd.s32 4294967294, %s645_s27   ;;  %s645_s27 = sphi %s695_s27, %s894_s27   ;;  %s641_s26 = sphi %s693_s26, %s893_s26   ;;  %s637_s25 = sphi %s691_s25, %s892_s25   ;;  %s633_s24 = sphi %s689_s24, %s891_s24  }
   0x4   : > { %s714_s30 = sadd.s32 1, %s645_s27   ;;  %s179_s8 = sadd.s32 1, %s641_s26 }
   0x5   : > { %s176_s9 = ssub.s32 %s645_s27, %s714_s30  ;;  %p189_p0 = scmp.ne.s32.totalorder %s641_s26, %s637_s25 }
   0x6   : > { %p177_p1 = scmp.eq.s32.totalorder %s176_s9, 0  ;;  %p190_p2 = scmp.eq.s32.totalorder %s710_s28, 1 }
   0x7   : > { %p195_p3 = scmp.ne.s32.totalorder %s637_s25, %s633_s24  ;;  %p196_p4 = scmp.eq.s32.totalorder %s525_s29, 1 }
   0x8   : > { %s725_s10 = scalar_select %p177_p1, %s641_s26, %s179_s8  }
   0x9   : > { %p727_p5 = por %p190_p2, %p189_p0  ;;  %p731_p6 = por %p196_p4, %p195_p3 }
   0xa   : > { %p528_p7 = scmp.ge.s32.totalorder %s645_s27, 1  ;;  %p239_p8 = scmp.lt.s32.totalorder %s645_s27, 3 }
   0xc   : > { %p240_p9 = pnand %p528_p7, %p239_p8 }
   0xd   : > { %p270_p10 = scmp.lt.s32.totalorder (!%p240_p9), %s710_s28, 1  ;;  %s647_s29 = smov (!%p240_p9), 10  }
   0xe   : > { %243 = sbr.rel (%p240_p9) target bundleno = 560 (0x230), region = 48  ;;  %s267_s18 = sand.u32 (!%p240_p9), 1, %s637_s25  }
   0xf   : > { %s538_s20 = sshll.u32 (!%p240_p9), %s710_s28, 3  ;;  %s451_s13 = scalar_lea.sflag (!%p240_p9), [#allocation3], %s267_s18 }
  0x10   : > { %s461_s23 = scalar_lea.hbm (!%p240_p9), %s888_s7, %s538_s20  ;;  %s603_s17 = scalar_lea.hbm (!%p240_p9), %s888_s7, 16 }
  0x11   : > { %s465_s9 = sshll.u32 (!%p240_p9), %s461_s23, 4  ;;  %s466_s9 = int_to_ptr.hbm [resolvable:$true] %s465_s9 }
  0x12   : > { %s597_s14 = sshra.s32 (!%p240_p9), %s466_s9, 4  ;;  %s598_s14 = int_to_ptr.hbm [resolvable:$true] %s597_s14 }
  0x13   : > { %v278_v0 = vld [vmem:[%s882_s1 + $0x18] sm:$0xff]  ;;  %v277_v1 = vld [vmem:[%s882_s1 + $0x10] sm:$0xff]  ;;  %v276_v2 = vld [vmem:[%s882_s1 + $0x8] sm:$0xff]  ;;  %s271_s19 = scalar_select %p270_p10, %s710_s28, 1  ;;  %vm283_vm0 = vcmask 261120   ;;  %vm337_vm1 = vcmask 1041408  }
  0x14   : > { %299 = vmatpush.msra.mxu0 %v278_v0  ;;  %v275_v3 = vld [vmem:[%s882_s1] sm:$0xff]  ;;  %v332_v6 = vld [vmem:[%s885_s4 + $0x8] sm:$0x3]  ;;  %v310_v7 = vld [vmem:[%s884_s3 + $0x18] sm:$0xff]  ;;  %vm333_vm2 = vcmask 80896   ;;  %vm425_vm3 = vcmask 1045504   ;;  %p604_p0 = scmp.lt.s32.totalorder %s598_s14, %s888_s7 }
  0x15   : > { %s530_s22 = sshll.u32 %s271_s19, 3  ;;  %533 = vmatpush.msk.msra.mxu2 %vm337_vm1, %v332_v6  ;;  %v331_v8 = vld [vmem:[%s885_s4] sm:$0xff]  ;;  %323 = vmatpush.msra.mxu1 %v310_v7  ;;  %v309_v9 = vld [vmem:[%s884_s3 + $0x10] sm:$0xff]  ;;  %v308_v10 = vld [vmem:[%s884_s3 + $0x8] sm:$0xff]  ;;  %vm408_vm4 = vcmask 162816   ;;  %vm410_vm5 = vcmask 171008  }
  0x16   : > { %300 = vmatpush.msra.mxu0 %v277_v1  ;;  %s273_s8 = scalar_lea.vmem %s881_s0, %s530_s22  ;;  %v377_v11 = vld [vmem:[%s886_s5 + $0x78] sm:$0xff]  ;;  %v376_v12 = vld [vmem:[%s886_s5 + $0x70] sm:$0xff]  ;;  %v307_v13 = vld [vmem:[%s884_s3] sm:$0xff]  ;;  %vm412_vm6 = vcmask 433152   ;;  %vm421_vm7 = vcmask 441344   ;;  %s529_s19 = sshll.u32 %s267_s18, 3 }
  0x17   : > { %v274_v4 = vld [vmem:[%s273_s8] sm:$0xff]  ;;  %356 = vmatpush.msra.mxu2 %v331_v8  ;;  %324 = vmatpush.msra.mxu1 %v309_v9  ;;  %v375_v14 = vld [vmem:[%s886_s5 + $0x68] sm:$0xff]  ;;  %v373_v16 = vld [vmem:[%s886_s5 + $0x58] sm:$0xff]  ;;  %s648_s8 = smov 21   ;;  %s599_s15 = scalar_lea.hbm %s598_s14, 8 }
  0x18   : > { %301 = vmatpush.msra.mxu0 %v276_v2  ;;  %v398_v5 = vsel %vm283_vm0, %v274_v4, 0.0  ;;  %378 = vmatpush.msra.mxu3 %v377_v11  ;;  %v374_v15 = vld [vmem:[%s886_s5 + $0x60] sm:$0xff]  ;;  %v372_v17 = vld [vmem:[%s886_s5 + $0x50] sm:$0xff]  ;;  %v371_v21 = vld [vmem:[%s886_s5 + $0x48] sm:$0xff]  ;;  %p600_p11 = scmp.ne.s32.totalorder %s598_s14, %s599_s15  ;;  %p605_p1 = scmp.lt.s32.totalorder %s603_s17, %s599_s15 }
  0x19   : > { %399 = vadd.xlane.f32.xlu0 %v398_v5  ;;  %325 = vmatpush.msra.mxu1 %v308_v10  ;;  %v582_v18 = vld [vmem:[%s883_s2] ss:$0 sm:$0xff]  ;;  %v369_v23 = vld [vmem:[%s886_s5 + $0x38] sm:$0xff]  ;;  %v368_v24 = vld [vmem:[%s886_s5 + $0x30] sm:$0xff] }
  0x1a   : > { %302 = vmatpush.msra.mxu0 %v275_v3  ;;  %379 = vmatpush.msra.mxu3 %v376_v12  ;;  %v370_v22 = vld [vmem:[%s886_s5 + $0x40] sm:$0xff]  ;;  %v367_v25 = vld [vmem:[%s886_s5 + $0x28] sm:$0xff]  ;;  %v365_v27 = vld [vmem:[%s886_s5 + $0x18] sm:$0xff]  ;;  %p601_p12 = pnand %p600_p11, %p727_p5  ;;  %p606_p2 = por %p605_p1, %p604_p0 }
  0x1b   : > { %531 = vmatmul.msk.f32.vlgmr.msra.gmra.mxu0 %vm283_vm0, %v274_v4  ;;  %326 = vmatpush.msra.mxu1 %v307_v13  ;;  %v366_v26 = vld [vmem:[%s886_s5 + $0x20] sm:$0xff]  ;;  %v364_v28 = vld [vmem:[%s886_s5 + $0x10] sm:$0xff]  ;;  %v363_v29 = vld [vmem:[%s886_s5 + $0x8] sm:$0xff] }
  0x1c   : > { %532 = vmatmul.msk.f32.vlgmr.msra.gmra.mxu1 %vm283_vm0, %v274_v4  ;;  %380 = vmatpush.msra.mxu3 %v375_v14  ;;  %v362_v30 = vld [vmem:[%s886_s5] sm:$0xff]  ;;  %v420_v31 = vld [vmem:[%s887_s6 + $0x30] sm:$0x3f]  ;;  %v419_v32 = vld [vmem:[%s887_s6 + $0x28] sm:$0xff]  ;;  %p602_p13 = pneg %p601_p12 }
  0x1d   : > { %404 = vrot.lane.b32.xlu1 %v274_v4, %s648_s8  ;;  %535 = vmatpush.msk.msrb.mxu2 %vm425_vm3, %v420_v31  ;;  %v418_v33 = vld [vmem:[%s887_s6 + $0x20] sm:$0xff]  ;;  %v417_v34 = vld [vmem:[%s887_s6 + $0x18] sm:$0xff]  ;;  %v416_v38 = vld [vmem:[%s887_s6 + $0x10] sm:$0xff] }
  0x1e   : > { %381 = vmatpush.msra.mxu3 %v374_v15  ;;  %v415_v39 = vld [vmem:[%s887_s6 + $0x8] sm:$0xff]  ;;  %v414_v40 = vld [vmem:[%s887_s6] sm:$0xff]  ;;  %p607_p3 = pnand %p606_p2, %p602_p13 }
  0x1f   : > { %439 = vmatpush.msrb.mxu2 %v419_v32 }
  0x20   : > { %382 = vmatpush.msra.mxu3 %v373_v16 }
  0x21   : > { %440 = vmatpush.msrb.mxu2 %v418_v33 }
  0x22   : > { %383 = vmatpush.msra.mxu3 %v372_v17 }
  0x23   : > { %441 = vmatpush.msrb.mxu2 %v417_v34 }
  0x24   : > { %384 = vmatpush.msra.mxu3 %v371_v21 }
  0x25   : > { %442 = vmatpush.msrb.mxu2 %v416_v38 }
  0x26   : > { %385 = vmatpush.msra.mxu3 %v370_v22 }
  0x27   : > { %443 = vmatpush.msrb.mxu2 %v415_v39 }
  0x28   : > { %386 = vmatpush.msra.mxu3 %v369_v23 }
  0x29   : > { %444 = vmatpush.msrb.mxu2 %v414_v40 }
  0x2a   : > { %387 = vmatpush.msra.mxu3 %v368_v24 }
  0x2c   : > { %388 = vmatpush.msra.mxu3 %v367_v25 }
  0x2e   : > { %389 = vmatpush.msra.mxu3 %v366_v26 }
  0x30   : > { %390 = vmatpush.msra.mxu3 %v365_v27 }
  0x32   : > { %391 = vmatpush.msra.mxu3 %v364_v28 }
  0x34   : > { %392 = vmatpush.msra.mxu3 %v363_v29 }
  0x36   : > { %393 = vmatpush.msra.mxu3 %v362_v30 }
  0x8c   : > { %v400_v41 = vpop.xlane.xlu0 %399 }
  0x8f   : > { %v405_v44 = vpop.permute.xlu1 %404 }
  0x98   : > { %v304_v19 = vpop.f32.mrf.mxu0 }
  0x99   : > { %v305_v20 = vadd.f32 %v582_v18, %v304_v19  ;;  %v328_v35 = vpop.f32.mrf.mxu1 }
  0x9b   : > { %401 = vrot.lane.b32.xlu0 %v305_v20, %s647_s29  ;;  %534 = vmatmul.msk.f32.vlgmr.msra.gmra.mxu2 %vm333_vm2, %v305_v20  ;;  %s269_s29 = scalar_lea.vmem [#allocation2], %s529_s19 }
  0x9c   : > { %s463_s8 = sshll.u32 %s269_s29, 4  ;;  %s464_s8 = int_to_ptr.vmem [resolvable:$true] %s463_s8 }
 0x10d   : > { %v402_v42 = vpop.permute.xlu0 %401 }
 0x11e   : > { %v358_v36 = vpop.f32.mrf.mxu2 }
 0x11f   : > { %v361_v37 = vmul.f32 %v358_v36, %v328_v35 }
 0x121   : > { %394 = vmatmul.f32.vlgmr.msra.gmra.mxu3 %v361_v37 }
 0x1a4   : > { %v395_v43 = vpop.f32.mrf.mxu3 }
 0x1a5   : > { %v407_v45 = vsel %vm333_vm2, %v395_v43, %v402_v42 }
 0x1a6   : > { %v409_v46 = vsel %vm408_vm4, %v407_v45, %v400_v41 }
 0x1a7   : > { %v411_v47 = vsel %vm410_vm5, %v409_v46, %v405_v44 }
 0x1a8   : > { %v413_v48 = vsel %vm412_vm6, %v411_v47, 1.0 }
 0x1a9   : > { %536 = vmatmul.msk.f32.vlgmr.msrb.gmra.mxu2 %vm421_vm7, %v413_v48 }
 0x22c   : > { %v446_v49 = vpop.f32.mrf.mxu2 }
 0x22d   : > { %449 = vst [vmem:[%s269_s29] sm:$0xff] %v446_v49 }
 0x22e   : > { %610 = shalt.err (!%p607_p3)
}
 0x22f   : > { %541 = dma.vmem_to_hbm [thread:$0]  (%p727_p5), %s464_s8, 128, %s466_s9, %s451_s13  }
 0x230 PF: > { %p547_p4 = scmp.ge.s32.totalorder %s645_s27, 2  ;;  %s477_s18 = sand.u32 1, %s633_s24  }
 0x231   : > { %s478_s21 = scalar_lea.sflag [#allocation3], %s477_s18 }
 0x232   : > { %p544_p7 = pnand %p547_p4, %p731_p6 }
 0x234   : > { %p545_p8 = pneg %p544_p7 }
 0x236   : > { %628 = dma.done.wait (%p545_p8), %s478_s21, 128  }
 0x237   : > { %630 = vsyncadd (%p545_p8), %s478_s21, 4294967168  ;;  %p17_p9 = scmp.ge.s32.totalorder %s714_s30, 4   ;;  %s891_s24 = smov %s637_s25 }
 0x238   : > { %s892_s25 = smov %s641_s26  ;;  %s893_s26 = smov %s725_s10 }
 0x239   : > { %s894_s27 = smov %s714_s30  ;;  %19 = sbr.rel (!%p17_p9) target bundleno = 3 (0x3), region = 83 }
 0x23e   :  { %484 = vsyncpa [#allocation3], 1 }
 0x23f   :  { %486 = vsyncpa [#allocation3 + $0x1], 1 }

// kernel: tpu_custom_call.1
= control target key start
LH: loop header
LB: loop body
LE: loop exit
PB: predicated region body
PF: predicated region fallthrough
CT: control target
= control target key end

     0   :  { %12 = vsyncpa [#allocation3], 0  ;;  %s881_s0 = inlined_call_operand.vmem [shape: f32[16,32], index: 0, kind: input, shape index: {}]   ;;  %s882_s1 = inlined_call_operand.vmem [shape: f32[32,10], index: 1, kind: input, shape index: {}]   ;;  %s883_s2 = inlined_call_operand.vmem [shape: f32[1,10], index: 2, kind: input, shape index: {}]   ;;  %s884_s3 = inlined_call_operand.vmem [shape: f32[32,128], index: 3, kind: input, shape index: {}]   ;;  %s885_s4 = inlined_call_operand.vmem [shape: f32[10,128], index: 4, kind: input, shape index: {}]   ;;  %s886_s5 = inlined_call_operand.vmem [shape: f32[128,10], index: 5, kind: input, shape index: {}]   ;;  %s887_s6 = inlined_call_operand.vmem [shape: f32[54,128], index: 6, kind: input, shape index: {}]   ;;  %s888_s7 = inlined_call_operand.hbm [shape: f32[16,128], index: 7, kind: output, shape index: {}]  }
   0x1   :  { %14 = vsyncpa [#allocation3 + $0x1], 0  ;;  %s689_s24 = smov 0   ;;  %s691_s25 = smov 0  }
   0x2   :  { %s693_s26 = smov 0   ;;  %s695_s27 = smov 0  }
   0x3 LB: > { %s710_s28 = sadd.s32 4294967295, %s645_s27   ;;  %s525_s29 = sadd.s32 4294967294, %s645_s27   ;;  %s645_s27 = sphi %s695_s27, %s894_s27   ;;  %s641_s26 = sphi %s693_s26, %s893_s26   ;;  %s637_s25 = sphi %s691_s25, %s892_s25   ;;  %s633_s24 = sphi %s689_s24, %s891_s24  }
   0x4   : > { %s714_s30 = sadd.s32 1, %s645_s27   ;;  %s179_s8 = sadd.s32 1, %s641_s26 }
   0x5   : > { %s176_s9 = ssub.s32 %s645_s27, %s714_s30  ;;  %p189_p0 = scmp.ne.s32.totalorder %s641_s26, %s637_s25 }
   0x6   : > { %p177_p1 = scmp.eq.s32.totalorder %s176_s9, 0  ;;  %p190_p2 = scmp.eq.s32.totalorder %s710_s28, 1 }
   0x7   : > { %p195_p3 = scmp.ne.s32.totalorder %s637_s25, %s633_s24  ;;  %p196_p4 = scmp.eq.s32.totalorder %s525_s29, 1 }
   0x8   : > { %s725_s10 = scalar_select %p177_p1, %s641_s26, %s179_s8  }
   0x9   : > { %p727_p5 = por %p190_p2, %p189_p0  ;;  %p731_p6 = por %p196_p4, %p195_p3 }
   0xa   : > { %p528_p7 = scmp.ge.s32.totalorder %s645_s27, 1  ;;  %p239_p8 = scmp.lt.s32.totalorder %s645_s27, 3 }
   0xc   : > { %p240_p9 = pnand %p528_p7, %p239_p8 }
   0xd   : > { %p270_p10 = scmp.lt.s32.totalorder (!%p240_p9), %s710_s28, 1  ;;  %s647_s29 = smov (!%p240_p9), 10  }
   0xe   : > { %243 = sbr.rel (%p240_p9) target bundleno = 560 (0x230), region = 48  ;;  %s267_s18 = sand.u32 (!%p240_p9), 1, %s637_s25  }
   0xf   : > { %s538_s20 = sshll.u32 (!%p240_p9), %s710_s28, 3  ;;  %s451_s13 = scalar_lea.sflag (!%p240_p9), [#allocation3], %s267_s18 }
  0x10   : > { %s461_s23 = scalar_lea.hbm (!%p240_p9), %s888_s7, %s538_s20  ;;  %s603_s17 = scalar_lea.hbm (!%p240_p9), %s888_s7, 16 }
  0x11   : > { %s465_s9 = sshll.u32 (!%p240_p9), %s461_s23, 4  ;;  %s466_s9 = int_to_ptr.hbm [resolvable:$true] %s465_s9 }
  0x12   : > { %s597_s14 = sshra.s32 (!%p240_p9), %s466_s9, 4  ;;  %s598_s14 = int_to_ptr.hbm [resolvable:$true] %s597_s14 }
  0x13   : > { %v278_v0 = vld [vmem:[%s882_s1 + $0x18] sm:$0xff]  ;;  %v277_v1 = vld [vmem:[%s882_s1 + $0x10] sm:$0xff]  ;;  %v276_v2 = vld [vmem:[%s882_s1 + $0x8] sm:$0xff]  ;;  %s271_s19 = scalar_select %p270_p10, %s710_s28, 1  ;;  %vm283_vm0 = vcmask 261120   ;;  %vm337_vm1 = vcmask 1041408  }
  0x14   : > { %299 = vmatpush.msra.mxu0 %v278_v0  ;;  %v275_v3 = vld [vmem:[%s882_s1] sm:$0xff]  ;;  %v332_v6 = vld [vmem:[%s885_s4 + $0x8] sm:$0x3]  ;;  %v310_v7 = vld [vmem:[%s884_s3 + $0x18] sm:$0xff]  ;;  %vm333_vm2 = vcmask 80896   ;;  %vm425_vm3 = vcmask 1045504   ;;  %p604_p0 = scmp.lt.s32.totalorder %s598_s14, %s888_s7 }
  0x15   : > { %s530_s22 = sshll.u32 %s271_s19, 3  ;;  %533 = vmatpush.msk.msra.mxu2 %vm337_vm1, %v332_v6  ;;  %v331_v8 = vld [vmem:[%s885_s4] sm:$0xff]  ;;  %323 = vmatpush.msra.mxu1 %v310_v7  ;;  %v309_v9 = vld [vmem:[%s884_s3 + $0x10] sm:$0xff]  ;;  %v308_v10 = vld [vmem:[%s884_s3 + $0x8] sm:$0xff]  ;;  %vm408_vm4 = vcmask 162816   ;;  %vm410_vm5 = vcmask 171008  }
  0x16   : > { %300 = vmatpush.msra.mxu0 %v277_v1  ;;  %s273_s8 = scalar_lea.vmem %s881_s0, %s530_s22  ;;  %v377_v11 = vld [vmem:[%s886_s5 + $0x78] sm:$0xff]  ;;  %v376_v12 = vld [vmem:[%s886_s5 + $0x70] sm:$0xff]  ;;  %v307_v13 = vld [vmem:[%s884_s3] sm:$0xff]  ;;  %vm412_vm6 = vcmask 433152   ;;  %vm421_vm7 = vcmask 441344   ;;  %s529_s19 = sshll.u32 %s267_s18, 3 }
  0x17   : > { %v274_v4 = vld [vmem:[%s273_s8] sm:$0xff]  ;;  %356 = vmatpush.msra.mxu2 %v331_v8  ;;  %324 = vmatpush.msra.mxu1 %v309_v9  ;;  %v375_v14 = vld [vmem:[%s886_s5 + $0x68] sm:$0xff]  ;;  %v373_v16 = vld [vmem:[%s886_s5 + $0x58] sm:$0xff]  ;;  %s648_s8 = smov 21   ;;  %s599_s15 = scalar_lea.hbm %s598_s14, 8 }
  0x18   : > { %301 = vmatpush.msra.mxu0 %v276_v2  ;;  %v398_v5 = vsel %vm283_vm0, %v274_v4, 0.0  ;;  %378 = vmatpush.msra.mxu3 %v377_v11  ;;  %v374_v15 = vld [vmem:[%s886_s5 + $0x60] sm:$0xff]  ;;  %v372_v17 = vld [vmem:[%s886_s5 + $0x50] sm:$0xff]  ;;  %v371_v21 = vld [vmem:[%s886_s5 + $0x48] sm:$0xff]  ;;  %p600_p11 = scmp.ne.s32.totalorder %s598_s14, %s599_s15  ;;  %p605_p1 = scmp.lt.s32.totalorder %s603_s17, %s599_s15 }
  0x19   : > { %399 = vadd.xlane.f32.xlu0 %v398_v5  ;;  %325 = vmatpush.msra.mxu1 %v308_v10  ;;  %v582_v18 = vld [vmem:[%s883_s2] ss:$0 sm:$0xff]  ;;  %v369_v23 = vld [vmem:[%s886_s5 + $0x38] sm:$0xff]  ;;  %v368_v24 = vld [vmem:[%s886_s5 + $0x30] sm:$0xff] }
  0x1a   : > { %302 = vmatpush.msra.mxu0 %v275_v3  ;;  %379 = vmatpush.msra.mxu3 %v376_v12  ;;  %v370_v22 = vld [vmem:[%s886_s5 + $0x40] sm:$0xff]  ;;  %v367_v25 = vld [vmem:[%s886_s5 + $0x28] sm:$0xff]  ;;  %v365_v27 = vld [vmem:[%s886_s5 + $0x18] sm:$0xff]  ;;  %p601_p12 = pnand %p600_p11, %p727_p5  ;;  %p606_p2 = por %p605_p1, %p604_p0 }
  0x1b   : > { %531 = vmatmul.msk.f32.vlgmr.msra.gmra.mxu0 %vm283_vm0, %v274_v4  ;;  %326 = vmatpush.msra.mxu1 %v307_v13  ;;  %v366_v26 = vld [vmem:[%s886_s5 + $0x20] sm:$0xff]  ;;  %v364_v28 = vld [vmem:[%s886_s5 + $0x10] sm:$0xff]  ;;  %v363_v29 = vld [vmem:[%s886_s5 + $0x8] sm:$0xff] }
  0x1c   : > { %532 = vmatmul.msk.f32.vlgmr.msra.gmra.mxu1 %vm283_vm0, %v274_v4  ;;  %380 = vmatpush.msra.mxu3 %v375_v14  ;;  %v362_v30 = vld [vmem:[%s886_s5] sm:$0xff]  ;;  %v420_v31 = vld [vmem:[%s887_s6 + $0x30] sm:$0x3f]  ;;  %v419_v32 = vld [vmem:[%s887_s6 + $0x28] sm:$0xff]  ;;  %p602_p13 = pneg %p601_p12 }
  0x1d   : > { %404 = vrot.lane.b32.xlu1 %v274_v4, %s648_s8  ;;  %535 = vmatpush.msk.msrb.mxu2 %vm425_vm3, %v420_v31  ;;  %v418_v33 = vld [vmem:[%s887_s6 + $0x20] sm:$0xff]  ;;  %v417_v34 = vld [vmem:[%s887_s6 + $0x18] sm:$0xff]  ;;  %v416_v38 = vld [vmem:[%s887_s6 + $0x10] sm:$0xff] }
  0x1e   : > { %381 = vmatpush.msra.mxu3 %v374_v15  ;;  %v415_v39 = vld [vmem:[%s887_s6 + $0x8] sm:$0xff]  ;;  %v414_v40 = vld [vmem:[%s887_s6] sm:$0xff]  ;;  %p607_p3 = pnand %p606_p2, %p602_p13 }
  0x1f   : > { %439 = vmatpush.msrb.mxu2 %v419_v32 }
  0x20   : > { %382 = vmatpush.msra.mxu3 %v373_v16 }
  0x21   : > { %440 = vmatpush.msrb.mxu2 %v418_v33 }
  0x22   : > { %383 = vmatpush.msra.mxu3 %v372_v17 }
  0x23   : > { %441 = vmatpush.msrb.mxu2 %v417_v34 }
  0x24   : > { %384 = vmatpush.msra.mxu3 %v371_v21 }
  0x25   : > { %442 = vmatpush.msrb.mxu2 %v416_v38 }
  0x26   : > { %385 = vmatpush.msra.mxu3 %v370_v22 }
  0x27   : > { %443 = vmatpush.msrb.mxu2 %v415_v39 }
  0x28   : > { %386 = vmatpush.msra.mxu3 %v369_v23 }
  0x29   : > { %444 = vmatpush.msrb.mxu2 %v414_v40 }
  0x2a   : > { %387 = vmatpush.msra.mxu3 %v368_v24 }
  0x2c   : > { %388 = vmatpush.msra.mxu3 %v367_v25 }
  0x2e   : > { %389 = vmatpush.msra.mxu3 %v366_v26 }
  0x30   : > { %390 = vmatpush.msra.mxu3 %v365_v27 }
  0x32   : > { %391 = vmatpush.msra.mxu3 %v364_v28 }
  0x34   : > { %392 = vmatpush.msra.mxu3 %v363_v29 }
  0x36   : > { %393 = vmatpush.msra.mxu3 %v362_v30 }
  0x8c   : > { %v400_v41 = vpop.xlane.xlu0 %399 }
  0x8f   : > { %v405_v44 = vpop.permute.xlu1 %404 }
  0x98   : > { %v304_v19 = vpop.f32.mrf.mxu0 }
  0x99   : > { %v305_v20 = vadd.f32 %v582_v18, %v304_v19  ;;  %v328_v35 = vpop.f32.mrf.mxu1 }
  0x9b   : > { %401 = vrot.lane.b32.xlu0 %v305_v20, %s647_s29  ;;  %534 = vmatmul.msk.f32.vlgmr.msra.gmra.mxu2 %vm333_vm2, %v305_v20  ;;  %s269_s29 = scalar_lea.vmem [#allocation2], %s529_s19 }
  0x9c   : > { %s463_s8 = sshll.u32 %s269_s29, 4  ;;  %s464_s8 = int_to_ptr.vmem [resolvable:$true] %s463_s8 }
 0x10d   : > { %v402_v42 = vpop.permute.xlu0 %401 }
 0x11e   : > { %v358_v36 = vpop.f32.mrf.mxu2 }
 0x11f   : > { %v361_v37 = vmul.f32 %v358_v36, %v328_v35 }
 0x121   : > { %394 = vmatmul.f32.vlgmr.msra.gmra.mxu3 %v361_v37 }
 0x1a4   : > { %v395_v43 = vpop.f32.mrf.mxu3 }
 0x1a5   : > { %v407_v45 = vsel %vm333_vm2, %v395_v43, %v402_v42 }
 0x1a6   : > { %v409_v46 = vsel %vm408_vm4, %v407_v45, %v400_v41 }
 0x1a7   : > { %v411_v47 = vsel %vm410_vm5, %v409_v46, %v405_v44 }
 0x1a8   : > { %v413_v48 = vsel %vm412_vm6, %v411_v47, 1.0 }
 0x1a9   : > { %536 = vmatmul.msk.f32.vlgmr.msrb.gmra.mxu2 %vm421_vm7, %v413_v48 }
 0x22c   : > { %v446_v49 = vpop.f32.mrf.mxu2 }
 0x22d   : > { %449 = vst [vmem:[%s269_s29] sm:$0xff] %v446_v49 }
 0x22e   : > { %610 = shalt.err (!%p607_p3)
}
 0x22f   : > { %541 = dma.vmem_to_hbm [thread:$0]  (%p727_p5), %s464_s8, 128, %s466_s9, %s451_s13  }
 0x230 PF: > { %p547_p4 = scmp.ge.s32.totalorder %s645_s27, 2  ;;  %s477_s18 = sand.u32 1, %s633_s24  }
 0x231   : > { %s478_s21 = scalar_lea.sflag [#allocation3], %s477_s18 }
 0x232   : > { %p544_p7 = pnand %p547_p4, %p731_p6 }
 0x234   : > { %p545_p8 = pneg %p544_p7 }
 0x236   : > { %628 = dma.done.wait (%p545_p8), %s478_s21, 128  }
 0x237   : > { %630 = vsyncadd (%p545_p8), %s478_s21, 4294967168  ;;  %p17_p9 = scmp.ge.s32.totalorder %s714_s30, 4   ;;  %s891_s24 = smov %s637_s25 }
 0x238   : > { %s892_s25 = smov %s641_s26  ;;  %s893_s26 = smov %s725_s10 }
 0x239   : > { %s894_s27 = smov %s714_s30  ;;  %19 = sbr.rel (!%p17_p9) target bundleno = 3 (0x3), region = 83 }
 0x23e   :  { %484 = vsyncpa [#allocation3], 1 }
 0x23f   :  { %486 = vsyncpa [#allocation3 + $0x1], 1 }

</bundles_post_ra>
